<compile_context>
chip_gen: v5e
topology: v5e:2x2
jax: 0.10.0
libtpu: 0.0.40
codegen_flags: <defaults>
</compile_context>

<pallas_src>
import math

import numpy as np
import jax
import jax.numpy as jnp
from jax.experimental import pallas as pl
from jax.experimental.pallas import tpu as pltpu


# --------------------------------------------------------------------------
# GELU (exact / erf form, matching nn.GELU() default)
# --------------------------------------------------------------------------
_INV_SQRT2 = 0.7071067811865476


def _gelu_erf(x):
    """0.5*x*(1+erf(x/sqrt(2))) with an A&S 7.1.26 erf polynomial."""
    z = x * _INV_SQRT2
    az = jnp.abs(z)
    # Divide goes to the EUP (same unit as exp) instead of the VALU.
    t = pl.reciprocal(1.0 + 0.3275911 * az, approx=True)
    poly = t * (0.254829592 + t * (-0.284496736 + t * (1.421413741
             + t * (-1.453152027 + t * 1.061405429))))
    erf_abs = 1.0 - poly * jnp.exp(-az * az)
    erf_z = jnp.where(z >= 0, erf_abs, -erf_abs)
    return 0.5 * x * (1.0 + erf_z)


# --------------------------------------------------------------------------
# Fused MLP kernel factory: per (row-tile i, hidden-tile j) grid step
# --------------------------------------------------------------------------
def _make_mlp_kernel(compute_dtype, acc_in_out):
    def kernel(x_ref, w1_ref, b1_ref, w2_ref, b2_ref, o_ref, *scratch):
        j = pl.program_id(1)
        acc_ref = o_ref if acc_in_out else scratch[0]

        @pl.when(j == 0)
        def _():
            acc_ref[...] = jnp.zeros_like(acc_ref)

        # First matmul: (tm, C) @ (C, th) -> f32 acc; bias + GELU fused.
        h = jnp.dot(x_ref[...], w1_ref[...], preferred_element_type=jnp.float32)
        h = _gelu_erf(h + b1_ref[...].astype(jnp.float32))

        # Second matmul: (tm, th) @ (th, C), accumulated into the resident block.
        contrib = jnp.dot(h.astype(compute_dtype), w2_ref[...],
                          preferred_element_type=jnp.float32)
        acc_ref[...] += contrib.astype(acc_ref.dtype)

        @pl.when(j == pl.num_programs(1) - 1)
        def _():
            out = acc_ref[...].astype(jnp.float32) + b2_ref[...].astype(jnp.float32)
            o_ref[...] = out.astype(o_ref.dtype)

    return kernel


# --------------------------------------------------------------------------
# Wrapper: tile selection, VMEM budgeting, padding, pallas_call
# --------------------------------------------------------------------------
def _round_up(n, m):
    return (n + m - 1) // m * m


def _pick_div(dim, candidates):
    for c in candidates:
        if dim >= c and dim % c == 0:
            return c
    return dim  # full dim (always a legal block extent)


def mlp_forward(x, w_fc, b_fc, w_proj, b_proj, *, compute_dtype=jnp.bfloat16):
    """x: (B, T, C); w_fc: (C, 4C); b_fc: (1|, 4C); w_proj: (4C, C); b_proj: (1|, C)."""
    B, T, C = x.shape
    H = w_fc.shape[1]
    M = B * T
    out_dtype = x.dtype

    # ------ generation-aware VMEM budget ------
    try:
        phys_vmem = int(pltpu.get_tpu_info().vmem_capacity_bytes)
    except Exception:
        phys_vmem = 64 * 1024 * 1024  # conservative (v7x-sized) fallback
    vmem_budget = min(phys_vmem * 3 // 4, 96 * 1024 * 1024)

    c_item = np.dtype(compute_dtype).itemsize
    o_item = np.dtype(out_dtype).itemsize
    acc_in_out = (out_dtype == jnp.float32)

    # ------ tile selection ------
    Mp8 = _round_up(M, 8)
    target_tm = 1024 if phys_vmem > 64 * 1024 * 1024 else 512
    tm = min(target_tm, Mp8)
    th = _pick_div(H, (512, 256, 128))

    def tile_bytes(tm_, th_):
        xb = tm_ * C * c_item * 2            # x tile, double-buffered
        w1b = C * th_ * c_item * 2           # W1 column tile
        w2b = th_ * C * c_item * 2           # W2 row tile
        bb = (th_ + C) * 4 * 2               # biases
        ob = tm_ * C * o_item * 2            # output tile
        accb = 0 if acc_in_out else tm_ * C * 4
        return xb + w1b + w2b + bb + ob + accb

    while tile_bytes(tm, th) > vmem_budget:
        if th > 128 and th % 2 == 0:
            th //= 2
        elif tm > 64:
            tm = max(64, _round_up(tm // 2, 8))
        else:
            break

    # Megacore (v7x): make sure the "parallel" row axis has >= 2 tiles for
    # large M so both TensorCores get work.
    if M > 512 and _round_up(M, tm) // tm < 2:
        tm = _round_up((M + 1) // 2, 8)

    Mp = _round_up(M, tm)

    # ------ operand staging (bf16 compute halves HBM weight traffic) ------
    x2d = x.reshape(M, C).astype(compute_dtype)
    if Mp != M:
        x2d = jnp.pad(x2d, ((0, Mp - M), (0, 0)))
    w1 = w_fc.astype(compute_dtype)
    w2 = w_proj.astype(compute_dtype)
    b1 = b_fc.reshape(1, H).astype(jnp.float32)
    b2 = b_proj.reshape(1, C).astype(jnp.float32)

    grid = (Mp // tm, H // th)
    kernel = _make_mlp_kernel(compute_dtype, acc_in_out)
    scratch_shapes = [] if acc_in_out else [pltpu.VMEM((tm, C), jnp.float32)]

    out = pl.pallas_call(
        kernel,
        out_shape=jax.ShapeDtypeStruct((Mp, C), out_dtype),
        grid=grid,
        in_specs=[
            pl.BlockSpec((tm, C), lambda i, j: (i, 0)),    # x rows
            pl.BlockSpec((C, th), lambda i, j: (0, j)),    # W1 column tile
            pl.BlockSpec((1, th), lambda i, j: (0, j)),    # b1 tile
            pl.BlockSpec((th, C), lambda i, j: (j, 0)),    # W2 row tile
            pl.BlockSpec((1, C), lambda i, j: (0, 0)),     # b2
        ],
        out_specs=pl.BlockSpec((tm, C), lambda i, j: (i, 0)),
        scratch_shapes=scratch_shapes,
        compiler_params=pltpu.CompilerParams(
            dimension_semantics=("parallel", "arbitrary"),
            vmem_limit_bytes=int(vmem_budget),
        ),
    )(x2d, w1, b1, w2, b2)

    if Mp != M:
        out = out[:M]
    return out.reshape(B, T, C)


# --------------------------------------------------------------------------
# Pure-JAX reference (matches the PyTorch forward in eval mode, f32)
# --------------------------------------------------------------------------
def _reference(x, w_fc, b_fc, w_proj, b_proj):
    h = jnp.matmul(x, w_fc) + b_fc.reshape(1, 1, -1)
    h = jax.nn.gelu(h, approximate=False)   # exact erf GELU, like nn.GELU()
    return jnp.matmul(h, w_proj) + b_proj.reshape(1, 1, -1)


# --------------------------------------------------------------------------
if __name__ == "__main__":
    # Config: d_model=32 -> hidden=128, bias=True, dropout=0.0 (eval mode)
    B, T, C = 2, 8, 32
    H = 4 * C

    key = jax.random.PRNGKey(0)
    kx, k1, k2, k3, k4 = jax.random.split(key, 5)

    x = jax.random.normal(kx, (B, T, C), jnp.float32)

    # Deterministic "PyTorch-like" Linear init: U(-1/sqrt(fan_in), 1/sqrt(fan_in)).
    bound_fc = 1.0 / math.sqrt(C)
    bound_pr = 1.0 / math.sqrt(H)
    w_fc = jax.random.uniform(k1, (C, H), jnp.float32, -bound_fc, bound_fc)
    b_fc = jax.random.uniform(k2, (1, H), jnp.float32, -bound_fc, bound_fc)
    w_proj = jax.random.uniform(k3, (H, C), jnp.float32, -bound_pr, bound_pr)
    b_proj = jax.random.uniform(k4, (1, C), jnp.float32, -bound_pr, bound_pr)

    y = mlp_forward(x, w_fc, b_fc, w_proj, b_proj)  # bf16 MXU path (default)
    jax.block_until_ready(y)

    y_ref = _reference(x, w_fc, b_fc, w_proj, b_proj)
    # bf16 operands -> bf16-level tolerance vs. the f32 reference.
    assert jnp.allclose(y, y_ref, atol=3e-2, rtol=3e-2), "mismatch vs reference"

    print("KERNEL_OK")
</pallas_src>

<mosaic_0001>
module attributes {stable_mosaic.version = 11 : i64} {
  func.func @kernel(%arg0: i32, %arg1: i32, %arg2: memref<16x32xbf16, #tpu.memory_space<vmem>>, %arg3: memref<32x128xbf16, #tpu.memory_space<vmem>>, %arg4: memref<1x128xf32, #tpu.memory_space<vmem>>, %arg5: memref<128x32xbf16, #tpu.memory_space<vmem>>, %arg6: memref<1x32xf32, #tpu.memory_space<vmem>>, %arg7: memref<16x32xf32, #tpu.memory_space<vmem>>) attributes {dimension_semantics = [#tpu.dimension_semantics<parallel>, #tpu.dimension_semantics<arbitrary>], iteration_bounds = array<i64: 1, 1>, scalar_prefetch = 0 : i64, scratch_operands = 0 : i64, tpu.core_type = #tpu.core_type<tc>, window_params = [{transform_indices = @transform_0, window_bounds = array<i64: 16, 32>}, {transform_indices = @transform_1, window_bounds = array<i64: 32, 128>}, {transform_indices = @transform_2, window_bounds = array<i64: 1, 128>}, {transform_indices = @transform_3, window_bounds = array<i64: 128, 32>}, {pipeline_mode = #tpu.pipeline_mode<synchronous>, transform_indices = @transform_4, window_bounds = array<i64: 1, 32>}, {transform_indices = @transform_5, window_bounds = array<i64: 16, 32>}]} {
    %c0_i32 = arith.constant 0 : i32
    %0 = arith.cmpi eq, %arg1, %c0_i32 : i32
    %1 = arith.extui %0 : i1 to i32
    %c0_i32_0 = arith.constant 0 : i32
    %2 = arith.cmpi ne, %1, %c0_i32_0 : i32
    scf.if %2 {
      %cst_29 = arith.constant 0.000000e+00 : f32
      %57 = vector.broadcast %cst_29 : f32 to vector<16x32xf32>
      %c0_30 = arith.constant 0 : index
      %c0_31 = arith.constant 0 : index
      %58 = vector.load %arg7[%c0_30, %c0_31] : memref<16x32xf32, #tpu.memory_space<vmem>>, vector<16x32xf32>
      tpu.vector_store %arg7[%c0_30, %c0_31], %57 {strides = array<i32>} : memref<16x32xf32, #tpu.memory_space<vmem>>, vector<16x32xf32>,
    } else {
    }
    %c0 = arith.constant 0 : index
    %c0_1 = arith.constant 0 : index
    %3 = vector.load %arg2[%c0, %c0_1] : memref<16x32xbf16, #tpu.memory_space<vmem>>, vector<16x32xbf16>
    %c0_2 = arith.constant 0 : index
    %c0_3 = arith.constant 0 : index
    %4 = vector.load %arg3[%c0_2, %c0_3] : memref<32x128xbf16, #tpu.memory_space<vmem>>, vector<32x128xbf16>
    %cst = arith.constant dense<0.000000e+00> : vector<16x128xf32>
    %5 = tpu.matmul %3, %4, %cst {dimension_numbers = #tpu.dot_dimension_numbers<[1], [0], [0], [1], [0, 0, 1, 1], [], []>} : vector<16x32xbf16>, vector<32x128xbf16>, vector<16x128xf32> -> vector<16x128xf32>
    %c0_4 = arith.constant 0 : index
    %c0_5 = arith.constant 0 : index
    %6 = vector.load %arg4[%c0_4, %c0_5] : memref<1x128xf32, #tpu.memory_space<vmem>>, vector<1x128xf32>
    %7 = vector.broadcast %6 : vector<1x128xf32> to vector<16x128xf32>
    %8 = arith.addf %5, %7 : vector<16x128xf32>
    %cst_6 = arith.constant 0.707106769 : f32
    %9 = vector.broadcast %cst_6 : f32 to vector<16x128xf32>
    %10 = arith.mulf %8, %9 : vector<16x128xf32>
    %11 = math.absf %10 : vector<16x128xf32>
    %cst_7 = arith.constant 0.327591091 : f32
    %12 = vector.broadcast %cst_7 : f32 to vector<16x128xf32>
    %13 = arith.mulf %12, %11 : vector<16x128xf32>
    %cst_8 = arith.constant 1.000000e+00 : f32
    %14 = vector.broadcast %cst_8 : f32 to vector<16x128xf32>
    %15 = arith.addf %14, %13 : vector<16x128xf32>
    %16 = tpu.reciprocal %15 {approx = true} : vector<16x128xf32> -> vector<16x128xf32>
    %cst_9 = arith.constant 1.06140542 : f32
    %17 = vector.broadcast %cst_9 : f32 to vector<16x128xf32>
    %18 = arith.mulf %16, %17 : vector<16x128xf32>
    %cst_10 = arith.constant -1.45315206 : f32
    %19 = vector.broadcast %cst_10 : f32 to vector<16x128xf32>
    %20 = arith.addf %19, %18 : vector<16x128xf32>
    %21 = arith.mulf %16, %20 : vector<16x128xf32>
    %cst_11 = arith.constant 1.42141378 : f32
    %22 = vector.broadcast %cst_11 : f32 to vector<16x128xf32>
    %23 = arith.addf %22, %21 : vector<16x128xf32>
    %24 = arith.mulf %16, %23 : vector<16x128xf32>
    %cst_12 = arith.constant -0.284496725 : f32
    %25 = vector.broadcast %cst_12 : f32 to vector<16x128xf32>
    %26 = arith.addf %25, %24 : vector<16x128xf32>
    %27 = arith.mulf %16, %26 : vector<16x128xf32>
    %cst_13 = arith.constant 0.254829586 : f32
    %28 = vector.broadcast %cst_13 : f32 to vector<16x128xf32>
    %29 = arith.addf %28, %27 : vector<16x128xf32>
    %30 = arith.mulf %16, %29 : vector<16x128xf32>
    %cst_14 = arith.constant 0.000000e+00 : f32
    %31 = vector.broadcast %cst_14 : f32 to vector<16x128xf32>
    %32 = arith.subf %31, %11 : vector<16x128xf32>
    %33 = arith.mulf %32, %11 : vector<16x128xf32>
    %34 = math.exp %33 : vector<16x128xf32>
    %35 = arith.mulf %30, %34 : vector<16x128xf32>
    %cst_15 = arith.constant 1.000000e+00 : f32
    %36 = vector.broadcast %cst_15 : f32 to vector<16x128xf32>
    %37 = arith.subf %36, %35 : vector<16x128xf32>
    %cst_16 = arith.constant 0.000000e+00 : f32
    %38 = vector.broadcast %cst_16 : f32 to vector<16x128xf32>
    %39 = arith.cmpf oge, %10, %38 : vector<16x128xf32>
    %cst_17 = arith.constant 0.000000e+00 : f32
    %40 = vector.broadcast %cst_17 : f32 to vector<16x128xf32>
    %41 = arith.subf %40, %37 : vector<16x128xf32>
    %42 = arith.select %39, %37, %41 : vector<16x128xi1>, vector<16x128xf32>
    %cst_18 = arith.constant 5.000000e-01 : f32
    %43 = vector.broadcast %cst_18 : f32 to vector<16x128xf32>
    %44 = arith.mulf %43, %8 : vector<16x128xf32>
    %cst_19 = arith.constant 1.000000e+00 : f32
    %45 = vector.broadcast %cst_19 : f32 to vector<16x128xf32>
    %46 = arith.addf %45, %42 : vector<16x128xf32>
    %47 = arith.mulf %44, %46 : vector<16x128xf32>
    %48 = arith.truncf %47 : vector<16x128xf32> to vector<16x128xbf16>
    %c0_20 = arith.constant 0 : index
    %c0_21 = arith.constant 0 : index
    %49 = vector.load %arg5[%c0_20, %c0_21] : memref<128x32xbf16, #tpu.memory_space<vmem>>, vector<128x32xbf16>
    %cst_22 = arith.constant dense<0.000000e+00> : vector<16x32xf32>
    %50 = tpu.matmul %48, %49, %cst_22 {dimension_numbers = #tpu.dot_dimension_numbers<[1], [0], [0], [1], [0, 0, 1, 1], [], []>} : vector<16x128xbf16>, vector<128x32xbf16>, vector<16x32xf32> -> vector<16x32xf32>
    %c0_23 = arith.constant 0 : index
    %c0_24 = arith.constant 0 : index
    %51 = vector.load %arg7[%c0_23, %c0_24] : memref<16x32xf32, #tpu.memory_space<vmem>>, vector<16x32xf32>
    %52 = arith.addf %51, %50 : vector<16x32xf32>
    %c0_25 = arith.constant 0 : index
    %c0_26 = arith.constant 0 : index
    %53 = vector.load %arg7[%c0_25, %c0_26] : memref<16x32xf32, #tpu.memory_space<vmem>>, vector<16x32xf32>
    tpu.vector_store %arg7[%c0_25, %c0_26], %52 {strides = array<i32>} : memref<16x32xf32, #tpu.memory_space<vmem>>, vector<16x32xf32>,
    %c0_i32_27 = arith.constant 0 : i32
    %54 = arith.cmpi eq, %arg1, %c0_i32_27 : i32
    %55 = arith.extui %54 : i1 to i32
    %c0_i32_28 = arith.constant 0 : i32
    %56 = arith.cmpi ne, %55, %c0_i32_28 : i32
    scf.if %56 {
      %c0_29 = arith.constant 0 : index
      %c0_30 = arith.constant 0 : index
      %57 = vector.load %arg7[%c0_29, %c0_30] : memref<16x32xf32, #tpu.memory_space<vmem>>, vector<16x32xf32>
      %c0_31 = arith.constant 0 : index
      %c0_32 = arith.constant 0 : index
      %58 = vector.load %arg6[%c0_31, %c0_32] : memref<1x32xf32, #tpu.memory_space<vmem>>, vector<1x32xf32>
      %59 = vector.broadcast %58 : vector<1x32xf32> to vector<16x32xf32>
      %60 = arith.addf %57, %59 : vector<16x32xf32>
      %c0_33 = arith.constant 0 : index
      %c0_34 = arith.constant 0 : index
      %61 = vector.load %arg7[%c0_33, %c0_34] : memref<16x32xf32, #tpu.memory_space<vmem>>, vector<16x32xf32>
      tpu.vector_store %arg7[%c0_33, %c0_34], %60 {strides = array<i32>} : memref<16x32xf32, #tpu.memory_space<vmem>>, vector<16x32xf32>,
    } else {
    }
    return
  }
  func.func @transform_0(%arg0: i32, %arg1: i32) -> (i32, i32) {
    %c0_i32 = arith.constant 0 : i32
    %c0_i32_0 = arith.constant 0 : i32
    return %arg0, %c0_i32 : i32, i32
  }
  func.func @transform_1(%arg0: i32, %arg1: i32) -> (i32, i32) {
    %c0_i32 = arith.constant 0 : i32
    %c0_i32_0 = arith.constant 0 : i32
    return %c0_i32, %arg1 : i32, i32
  }
  func.func @transform_2(%arg0: i32, %arg1: i32) -> (i32, i32) {
    %c0_i32 = arith.constant 0 : i32
    %c0_i32_0 = arith.constant 0 : i32
    return %c0_i32, %arg1 : i32, i32
  }
  func.func @transform_3(%arg0: i32, %arg1: i32) -> (i32, i32) {
    %c0_i32 = arith.constant 0 : i32
    %c0_i32_0 = arith.constant 0 : i32
    return %arg1, %c0_i32 : i32, i32
  }
  func.func @transform_4(%arg0: i32, %arg1: i32) -> (i32, i32) {
    %c0_i32 = arith.constant 0 : i32
    %c0_i32_0 = arith.constant 0 : i32
    %c0_i32_1 = arith.constant 0 : i32
    return %c0_i32, %c0_i32_0 : i32, i32
  }
  func.func @transform_5(%arg0: i32, %arg1: i32) -> (i32, i32) {
    %c0_i32 = arith.constant 0 : i32
    %c0_i32_0 = arith.constant 0 : i32
    return %arg0, %c0_i32 : i32, i32
  }
}

</mosaic_0001>

<bundles_post_ra>
// kernel: tpu_custom_call.1
= control target key start
LH: loop header
LB: loop body
LE: loop exit
PB: predicated region body
PF: predicated region fallthrough
CT: control target
= control target key end

     0   :  { %s425_s0 = inlined_call_operand.vmem [shape: bf16[16,32], index: 0, kind: input, shape index: {}]   ;;  %s426_s1 = inlined_call_operand.vmem [shape: bf16[32,128], index: 1, kind: input, shape index: {}]   ;;  %s427_s2 = inlined_call_operand.vmem [shape: f32[1,128], index: 2, kind: input, shape index: {}]   ;;  %s428_s3 = inlined_call_operand.vmem [shape: bf16[128,32], index: 3, kind: input, shape index: {}]   ;;  %s429_s4 = inlined_call_operand.vmem [shape: f32[1,32], index: 4, kind: input, shape index: {}]   ;;  %s430_s5 = inlined_call_operand.hbm [shape: f32[16,32], index: 5, kind: output, shape index: {}]  }
   0x1   :  { %v289_v0 = vld [vmem:[%s426_s1 + $0x8] sm:$0xff]  ;;  %v288_v1 = vld [vmem:[%s426_s1] sm:$0xff] }
   0x2   :  { %66 = vmatpush.bf16.msra.mxu0 %v289_v0 }
   0x3   :  { %10 = vsyncpa [#allocation3], 0  ;;  %v287_v2 = vld [vmem:[%s425_s0] sm:$0xff]  ;;  %vm26_vm0 = vcmask 261120   ;;  %v297_v3 = vld [vmem:[%s428_s3 + $0x38] sm:$0xff]  ;;  %v338_v36 = vmov 0.0  }
   0x4   :  { %191 = vmatpush.bf16.msra.mxu1 %v297_v3  ;;  %v296_v4 = vld [vmem:[%s428_s3 + $0x30] sm:$0xff]  ;;  %v295_v5 = vld [vmem:[%s428_s3 + $0x28] sm:$0xff]  ;;  %v302_v6 = vld [vmem:[%s427_s2] ss:$0 sm:$0xff]  ;;  %27 = vst.msk [vmem:[#allocation2] sm:$0xff] %vm26_vm0, %v338_v36  ;;  %s339_s15 = smov [#allocation2]  }
   0x5   :  { %v294_v7 = vld [vmem:[%s428_s3 + $0x20] sm:$0xff]  ;;  %v293_v11 = vld [vmem:[%s428_s3 + $0x18] sm:$0xff]  ;;  %v292_v14 = vld [vmem:[%s428_s3 + $0x10] sm:$0xff]  ;;  %28 = vst.msk [vmem:[#allocation2 + $0x8] sm:$0xff] %vm26_vm0, %v338_v36  ;;  %s228_s16 = sshll.u32 %s339_s15, 4  ;;  %s230_s19 = sshll.u32 %s430_s5, 4  ;;  %s229_s16 = int_to_ptr.vmem [resolvable:$true] %s228_s16  ;;  %s231_s19 = int_to_ptr.hbm [resolvable:$true] %s230_s19 }
   0x6   :  { %67 = vmatpush.bf16.msra.mxu0 %v288_v1  ;;  %v291_v19 = vld [vmem:[%s428_s3 + $0x8] sm:$0xff]  ;;  %v290_v22 = vld [vmem:[%s428_s3] sm:$0xff]  ;;  %s341_s20 = smov 8  }
   0x8   :  { %192 = vmatpush.bf16.msra.mxu1 %v296_v4 }
   0x9   :  { %254 = vmatmul.msk.bf16.vlgmr.msra.gmra.mxu0 %vm26_vm0, %v287_v2 }
   0xb   :  { %v205_v4 = vld [vmem:[#allocation2] sm:$0xff] }
   0xc   :  { %193 = vmatpush.bf16.msra.mxu1 %v295_v5 }
  0x10   :  { %194 = vmatpush.bf16.msra.mxu1 %v294_v7  ;;  %v206_v7 = vld [vmem:[#allocation2 + $0x8] sm:$0xff] }
  0x14   :  { %195 = vmatpush.bf16.msra.mxu1 %v293_v11 }
  0x18   :  { %196 = vmatpush.bf16.msra.mxu1 %v292_v14 }
  0x1c   :  { %197 = vmatpush.bf16.msra.mxu1 %v291_v19 }
  0x20   :  { %198 = vmatpush.bf16.msra.mxu1 %v290_v22 }
  0x86   :  { %v69_v8 = vpop.f32.mrf.mxu0 }
  0x87   :  { %v397_v9 = vadd.f32 %v302_v6, %v69_v8  ;;  %v303_v8 = vld [vmem:[%s429_s4] ss:$0 sm:$0xff]  ;;  %s340_s4 = smov 128  }
  0x89   :  { %v74_v10 = vmul.f32 0.70710677, %v397_v9  ;;  %v120_v62 = vmul.f32 0.5, %v397_v9 }
  0x8b   :  { %v76_v12 = vand.u32 2147483647, %v74_v10  ;;  %vm114_vm1 = vcmp.ge.f32.partialorder %v74_v10, 0.0 }
  0x8d   :  { %v78_v13 = vmul.f32 0.3275911, %v76_v12  ;;  %v102_v24 = vsub.f32 0.0, %v76_v12 }
  0x8e   :  { %v71_v15 = vpop.f32.mrf.mxu0 }
  0x8f   :  { %v80_v16 = vadd.f32 1.0, %v78_v13  ;;  %v72_v17 = vadd.f32 %v302_v6, %v71_v15  ;;  %v104_v28 = vmul.f32 %v102_v24, %v76_v12 }
  0x91   :  { %304 = vrcp.f32 %v80_v16  ;;  %v75_v18 = vmul.f32 0.70710677, %v72_v17  ;;  %v106_v32 = vmul.f32 1.442695, %v104_v28  ;;  %v121_v63 = vmul.f32 0.5, %v72_v17 }
  0x93   :  { %v77_v20 = vand.u32 2147483647, %v75_v18  ;;  %vm115_vm2 = vcmp.ge.f32.partialorder %v75_v18, 0.0 }
  0x95   :  { %v79_v21 = vmul.f32 0.3275911, %v77_v20  ;;  %v103_v33 = vsub.f32 0.0, %v77_v20 }
  0x97   :  { %v305_v23 = vpop.eup %304  ;;  %v81_v25 = vadd.f32 1.0, %v79_v21  ;;  %v105_v39 = vmul.f32 %v103_v33, %v77_v20 }
  0x98   :  { %v84_v26 = vmul.f32 1.0614054, %v305_v23 }
  0x99   :  { %306 = vrcp.f32 %v81_v25  ;;  %v108_v44 = vmul.f32 1.442695, %v105_v39 }
  0x9a   :  { %v86_v27 = vadd.f32 -1.4531521, %v84_v26  ;;  %308 = vpow2.f32 %v106_v32 }
  0x9b   :  { %310 = vpow2.f32 %v108_v44 }
  0x9c   :  { %v88_v29 = vmul.f32 %v305_v23, %v86_v27 }
  0x9e   :  { %v90_v30 = vadd.f32 1.4214138, %v88_v29 }
  0x9f   :  { %v307_v31 = vpop.eup %306 }
  0xa0   :  { %v85_v34 = vmul.f32 1.0614054, %v307_v31  ;;  %v92_v35 = vmul.f32 %v305_v23, %v90_v30  ;;  %v309_v47 = vpop.eup %308 }
  0xa1   :  { %v311_v55 = vpop.eup %310 }
  0xa2   :  { %v87_v37 = vadd.f32 -1.4531521, %v85_v34  ;;  %v94_v38 = vadd.f32 -0.28449672, %v92_v35 }
  0xa4   :  { %v89_v40 = vmul.f32 %v307_v31, %v87_v37  ;;  %v96_v41 = vmul.f32 %v305_v23, %v94_v38 }
  0xa6   :  { %v91_v42 = vadd.f32 1.4214138, %v89_v40  ;;  %v98_v43 = vadd.f32 0.2548296, %v96_v41 }
  0xa8   :  { %v93_v45 = vmul.f32 %v307_v31, %v91_v42  ;;  %v100_v46 = vmul.f32 %v305_v23, %v98_v43 }
  0xaa   :  { %v95_v48 = vadd.f32 -0.28449672, %v93_v45  ;;  %v110_v49 = vmul.f32 %v309_v47, %v100_v46 }
  0xac   :  { %v97_v50 = vmul.f32 %v307_v31, %v95_v48  ;;  %v112_v51 = vsub.f32 1.0, %v110_v49 }
  0xae   :  { %v99_v52 = vadd.f32 0.2548296, %v97_v50  ;;  %v116_v54 = vsub.f32 0.0, %v112_v51 }
  0xb0   :  { %v101_v53 = vmul.f32 %v307_v31, %v99_v52  ;;  %v118_v58 = vsel %vm114_vm1, %v112_v51, %v116_v54 }
  0xb1   :  { %v122_v60 = vadd.f32 1.0, %v118_v58 }
  0xb2   :  { %v111_v56 = vmul.f32 %v311_v55, %v101_v53 }
  0xb3   :  { %v124_v1 = vmul.f32 %v122_v60, %v120_v62 }
  0xb4   :  { %v113_v57 = vsub.f32 1.0, %v111_v56 }
  0xb6   :  { %v117_v59 = vsub.f32 0.0, %v113_v57 }
  0xb8   :  { %v119_v61 = vsel %vm115_vm2, %v113_v57, %v117_v59 }
  0xb9   :  { %v123_v0 = vadd.f32 1.0, %v119_v61 }
  0xbb   :  { %v125_v2 = vmul.f32 %v123_v0, %v121_v63 }
  0xbd   :  { %v126_v3 = vpack.c.bf16 %v125_v2, %v124_v1 }
  0xbf   :  { %199 = vmatmul.bf16.vlgmr.msra.gmra.mxu1 %v126_v3 }
 0x13c   :  { %v200_v5 = vpop.f32.mrf.mxu1 }
 0x13d   :  { %v207_v6 = vadd.f32 %v205_v4, %v200_v5 }
 0x13f   :  { %209 = vst.msk [vmem:[#allocation2] sm:$0xff] %vm26_vm0, %v207_v6 }
 0x144   :  { %v202_v10 = vpop.f32.mrf.mxu1 }
 0x145   :  { %v208_v11 = vadd.f32 %v206_v7, %v202_v10 }
 0x146   :  { %v214_v12 = vld [vmem:[#allocation2] sm:$0xff] }
 0x147   :  { %v220_v9 = vadd.f32 %v303_v8, %v214_v12  ;;  %210 = vst.msk [vmem:[#allocation2 + $0x8] sm:$0xff] %vm26_vm0, %v208_v11 }
 0x149   :  { %222 = vst.msk [vmem:[#allocation2] sm:$0xff] %vm26_vm0, %v220_v9 }
 0x14e   :  { %v215_v13 = vld [vmem:[#allocation2 + $0x8] sm:$0xff] }
 0x14f   :  { %v221_v14 = vadd.f32 %v303_v8, %v215_v13 }
 0x151   :  { %223 = vst.msk [vmem:[#allocation2 + $0x8] sm:$0xff] %vm26_vm0, %v221_v14 }
 0x152   :  { %236 = dma.vmem_to_hbm [thread:$0]  %s229_s16, 256, %s231_s19, [#allocation3], %s340_s4, %s340_s4, %s341_s20  }
 0x153   :  { %336 = dma.done.wait [#allocation3], 256  }
 0x154   :  { %337 = vsyncadd [#allocation3], 4294967040 }
 0x155   :  { %241 = vsyncpa [#allocation3], 1 }

</bundles_post_ra>
